<compile_context>
chip_gen: v6e
topology: v6e:2x2x1
jax: 0.10.0
libtpu: 0.0.40
codegen_flags: <defaults>
</compile_context>

<pallas_src>
import functools

import jax
import jax.numpy as jnp
from jax.experimental import pallas as pl
from jax.experimental.pallas import tpu as pltpu


_VMEM_BUDGET_BYTES = 12 << 20   # stay inside v5e's 16 MiB scoped-VMEM default
_FAST_PATH_MACS = 1 << 18       # below this, pallas_call is pure overhead


def _round_up(a, m):
    return -(-a // m) * m


def _sublane_multiple(dtype):
    # Sub-32-bit dtypes pack along sublanes: 8 rows for 4B, 16 for 2B, 32 for 1B.
    return {4: 8, 2: 16, 1: 32}[jnp.dtype(dtype).itemsize]


def _split(dim, align, max_tile):
    """Pad `dim` to `align`, then split into equal `align`-multiple tiles of at
    most ~max_tile.  Returns (tile, padded_dim, num_tiles) with
    padded_dim == tile * num_tiles.  Avoids the round_up(dim, tile) blow-up
    (e.g. 600 -> 2x320 = 640 instead of 2x512 = 1024)."""
    dmin = _round_up(dim, align)
    nt = max(1, -(-dmin // max_tile))
    tile = _round_up(-(-dmin // nt), align)
    return tile, tile * nt, nt


def _nconv_kernel_resident(a_ref, x_ref, o_ref):
    """Single-W-strip kernel.  A (Vp, Wp) is fully VMEM-resident (constant
    block index -> DMA'd once); x's block index is constant across the
    innermost V-tile grid axis, so its DMA is skipped between V tiles."""
    tv = o_ref.shape[0]
    v0 = pl.multiple_of(pl.program_id(2) * tv, tv)
    o_ref[...] = jnp.dot(
        a_ref[pl.ds(v0, tv), :], x_ref[...],
        preferred_element_type=jnp.float32,
    ).astype(o_ref.dtype)


def _nconv_kernel_acc(a_ref, x_ref, o_ref, acc_ref):
    """Fallback tiled-reduction kernel (W too large for a resident strip)."""
    @pl.when(pl.program_id(3) == 0)
    def _init():
        acc_ref[...] = jnp.zeros_like(acc_ref)

    acc_ref[...] += jnp.dot(a_ref[...], x_ref[...],
                            preferred_element_type=jnp.float32)

    @pl.when(pl.program_id(3) == pl.num_programs(3) - 1)
    def _finalize():
        o_ref[...] = acc_ref[...].astype(o_ref.dtype)


def nconv(x, A, *, max_tv=512, max_tl=512, max_tw=512, force_pallas=False):
    """out[n, v, l] = sum_w A[v, w] * x[n, w, l]   (einsum 'nwl,vw->nvl')."""
    n, w, l = x.shape
    v, w2 = A.shape
    assert w == w2, f"contraction dims mismatch: x has W={w}, A has W={w2}"

    compute_dtype = jnp.result_type(x.dtype, A.dtype)
    x = x.astype(compute_dtype)
    A = A.astype(compute_dtype)

    # Small-shape fast path: for tiny graphs (e.g. V=W=8, L=16) lane padding
    # (8 -> 128) plus kernel/DMA overhead dwarfs the math; plain einsum wins.
    if not force_pallas and n * v * w * l <= _FAST_PATH_MACS:
        return jnp.einsum('nwl,vw->nvl', x, A)

    isz = jnp.dtype(compute_dtype).itemsize
    sub = _sublane_multiple(compute_dtype)

    # ---- Primary (resident) tiling: single W strip, A fully in VMEM --------
    tv, Vp, nvt = _split(v, sub, max_tv)
    tl, Lp, nlt = _split(l, 128, max_tl)
    Wp = _round_up(w, 128)

    def _resident_bytes(tl_):
        # A (x2 double-buffer headroom) + double-buffered x block + out block.
        return (2 * Vp * Wp + 2 * Wp * tl_ + 2 * tv * tl_) * isz

    while _resident_bytes(tl) > _VMEM_BUDGET_BYTES and tl > 128:
        tl, Lp, nlt = _split(l, 128, max(128, tl - 128))
    use_resident = _resident_bytes(tl) <= _VMEM_BUDGET_BYTES

    if not use_resident:
        # ---- Fallback: tiled W reduction with an f32 VMEM accumulator ------
        tv, Vp, nvt = _split(v, sub, min(max_tv, 256))
        tl, Lp, nlt = _split(l, 128, min(max_tl, 512))
        tw, Wp, nwt = _split(w, 128, max_tw)

    # Zero-pad once in the wrapper (zeros along W contribute nothing).
    xp = x if (Wp == w and Lp == l) else jnp.pad(
        x, ((0, 0), (0, Wp - w), (0, Lp - l)))
    Ap = A if (Vp == v and Wp == w) else jnp.pad(
        A, ((0, Vp - v), (0, Wp - w)))

    cost = pl.CostEstimate(
        flops=2 * n * Vp * Wp * Lp,
        transcendentals=0,
        bytes_accessed=(n * Wp * Lp + Vp * Wp + 2 * n * Vp * Lp) * isz,
    )

    if use_resident:
        grid = (n, nlt, nvt)          # V-tile axis innermost: x DMA reused.
        out = pl.pallas_call(
            _nconv_kernel_resident,
            out_shape=jax.ShapeDtypeStruct((n, Vp, Lp), compute_dtype),
            grid=grid,
            in_specs=[
                # A resident: whole (padded) array, constant block index.
                pl.BlockSpec((Vp, Wp), lambda b, j, i: (0, 0)),
                # x strip (Wp, tl) of batch row b; constant across V tiles.
                pl.BlockSpec((None, Wp, tl), lambda b, j, i: (b, 0, j)),
            ],
            out_specs=pl.BlockSpec((None, tv, tl), lambda b, j, i: (b, i, j)),
            compiler_params=pltpu.CompilerParams(
                dimension_semantics=("parallel", "parallel", "parallel")),
            cost_estimate=cost,
        )(Ap, xp)
    else:
        grid = (n, nvt, nlt, nwt)     # reduction (W) axis last.
        out = pl.pallas_call(
            _nconv_kernel_acc,
            out_shape=jax.ShapeDtypeStruct((n, Vp, Lp), compute_dtype),
            grid=grid,
            in_specs=[
                pl.BlockSpec((tv, tw), lambda b, i, j, k: (i, k)),
                pl.BlockSpec((None, tw, tl), lambda b, i, j, k: (b, k, j)),
            ],
            out_specs=pl.BlockSpec((None, tv, tl), lambda b, i, j, k: (b, i, j)),
            scratch_shapes=[pltpu.VMEM((tv, tl), jnp.float32)],
            compiler_params=pltpu.CompilerParams(
                dimension_semantics=("parallel", "parallel", "parallel",
                                     "arbitrary")),
            cost_estimate=cost,
        )(Ap, xp)

    return out[:, :v, :l]


if __name__ == "__main__":
    key = jax.random.PRNGKey(0)
    k1, k2, k3, k4 = jax.random.split(key, 4)

    # Module-scale shapes: batch N=2, num_nodes V=W=8, seq_len L=16.
    x = jax.random.normal(k1, (2, 8, 16), dtype=jnp.float32)
    A = jax.random.normal(k2, (8, 8), dtype=jnp.float32)
    ref = jnp.einsum('nwl,vw->nvl', x, A, precision=jax.lax.Precision.HIGHEST)

    # (a) Pallas path forced at small shapes (exercises the resident kernel).
    out = jax.jit(functools.partial(nconv, force_pallas=True))(x, A)
    jax.block_until_ready(out)
    assert out.shape == (2, 8, 16)
    assert jnp.allclose(out, ref, atol=1e-2, rtol=1e-3), "mismatch (small/pallas)"

    # (b) default dispatch at small shapes -> einsum fast path.
    out_fp = jax.jit(nconv)(x, A)
    jax.block_until_ready(out_fp)
    assert jnp.allclose(out_fp, ref, atol=1e-2, rtol=1e-3), "mismatch (fast path)"

    # (c) non-aligned mid-size shapes: 2 V-tiles (tv=264, Vp=528), one L-tile
    #     (tl=384), W padded 600 -> 640, single-W-strip resident path.
    x2 = jax.random.normal(k3, (2, 600, 300), dtype=jnp.float32)
    A2 = jax.random.normal(k4, (520, 600), dtype=jnp.float32)
    out2 = jax.jit(nconv)(x2, A2)
    jax.block_until_ready(out2)
    ref2 = jnp.einsum('nwl,vw->nvl', x2, A2, precision=jax.lax.Precision.HIGHEST)
    assert out2.shape == (2, 520, 300)
    assert jnp.allclose(out2, ref2, atol=1e-2, rtol=1e-3), "mismatch (mid/pallas)"

    assert bool(jnp.all(jnp.isfinite(out))) and bool(jnp.all(jnp.isfinite(out2)))
    print("KERNEL_OK")
</pallas_src>

<mosaic_0001>
module attributes {stable_mosaic.version = 11 : i64} {
  func.func @_nconv_kernel_resident(%arg0: i32, %arg1: i32, %arg2: i32, %arg3: memref<8x128xf32, #tpu.memory_space<vmem>>, %arg4: memref<1x128x128xf32, #tpu.memory_space<vmem>>, %arg5: memref<1x8x128xf32, #tpu.memory_space<vmem>>) attributes {dimension_semantics = [#tpu.dimension_semantics<parallel>, #tpu.dimension_semantics<parallel>, #tpu.dimension_semantics<parallel>], iteration_bounds = array<i64: 2, 1, 1>, scalar_prefetch = 0 : i64, scratch_operands = 0 : i64, tpu.core_type = #tpu.core_type<tc>, window_params = [{pipeline_mode = #tpu.pipeline_mode<synchronous>, transform_indices = @transform_0, window_bounds = array<i64: 8, 128>}, {transform_indices = @transform_1, window_bounds = array<i64: 1, 128, 128>}, {transform_indices = @transform_2, window_bounds = array<i64: 1, 8, 128>}]} {
    %c8_i32 = arith.constant 8 : i32
    %0 = arith.muli %arg2, %c8_i32 : i32
    %1 = tpu.assume_multiple %0, 8 : i32
    %2 = arith.index_cast %1 : i32 to index
    %c0 = arith.constant 0 : index
    %3 = vector.load %arg3[%2, %c0] : memref<8x128xf32, #tpu.memory_space<vmem>>, vector<8x128xf32>
    %c0_0 = arith.constant 0 : index
    %c0_1 = arith.constant 0 : index
    %c0_2 = arith.constant 0 : index
    %4 = vector.load %arg4[%c0_0, %c0_1, %c0_2] : memref<1x128x128xf32, #tpu.memory_space<vmem>>, vector<1x128x128xf32>
    %5 = vector.shape_cast %4 : vector<1x128x128xf32> to vector<128x128xf32>
    %cst = arith.constant dense<0.000000e+00> : vector<8x128xf32>
    %6 = tpu.matmul %3, %5, %cst {dimension_numbers = #tpu.dot_dimension_numbers<[1], [0], [0], [1], [0, 0, 1, 1], [], []>} : vector<8x128xf32>, vector<128x128xf32>, vector<8x128xf32> -> vector<8x128xf32>
    %c0_3 = arith.constant 0 : index
    %c0_4 = arith.constant 0 : index
    %c0_5 = arith.constant 0 : index
    %7 = vector.load %arg5[%c0_3, %c0_4, %c0_5] : memref<1x8x128xf32, #tpu.memory_space<vmem>>, vector<1x8x128xf32>
    %8 = vector.shape_cast %7 : vector<1x8x128xf32> to vector<8x128xf32>
    %9 = vector.shape_cast %6 : vector<8x128xf32> to vector<1x8x128xf32>
    tpu.vector_store %arg5[%c0_3, %c0_4, %c0_5], %9 {strides = array<i32>} : memref<1x8x128xf32, #tpu.memory_space<vmem>>, vector<1x8x128xf32>,
    return
  }
  func.func @transform_0(%arg0: i32, %arg1: i32, %arg2: i32) -> (i32, i32) {
    %c0_i32 = arith.constant 0 : i32
    %c0_i32_0 = arith.constant 0 : i32
    %c0_i32_1 = arith.constant 0 : i32
    return %c0_i32, %c0_i32_0 : i32, i32
  }
  func.func @transform_1(%arg0: i32, %arg1: i32, %arg2: i32) -> (i32, i32, i32) {
    %c0_i32 = arith.constant 0 : i32
    %c0_i32_0 = arith.constant 0 : i32
    return %arg0, %c0_i32, %arg1 : i32, i32, i32
  }
  func.func @transform_2(%arg0: i32, %arg1: i32, %arg2: i32) -> (i32, i32, i32) {
    %c0_i32 = arith.constant 0 : i32
    return %arg0, %arg2, %arg1 : i32, i32, i32
  }
}

</mosaic_0001>

<bundles_post_ra>
// kernel: nconv.1
= control target key start
LH: loop header
LB: loop body
LE: loop exit
PB: predicated region body
PF: predicated region fallthrough
CT: control target
= control target key end

     0   :  { %7 = vsyncpa [#allocation3], 0  ;;  %s712_s0 = inlined_call_operand.vmem [shape: f32[8,128], index: 0, kind: input, shape index: {}]   ;;  %s713_s1 = inlined_call_operand.vmem [shape: f32[2,128,128], index: 1, kind: input, shape index: {}]   ;;  %s714_s2 = inlined_call_operand.hbm [shape: f32[2,8,128], index: 2, kind: output, shape index: {}]  }
   0x1   :  { %9 = vsyncpa [#allocation3 + $0x1], 0  ;;  %s580_s9 = smov 0   ;;  %s582_s10 = smov 0  }
   0x2   :  { %s584_s11 = smov 0   ;;  %s586_s12 = smov 0  }
   0x3   :  { %s588_s13 = smov 0   ;;  %s590_s14 = smov 0  }
   0x4 LB: > { %s362_s15 = sadd.s32 4294967295, %s560_s14   ;;  %s363_s16 = sadd.s32 4294967294, %s560_s14   ;;  %s560_s14 = sphi %s590_s14, %s15_s14   ;;  %s556_s13 = sphi %s588_s13, %s721_s13   ;;  %s552_s12 = sphi %s586_s12, %s720_s12   ;;  %s548_s11 = sphi %s584_s11, %s719_s11   ;;  %s544_s10 = sphi %s582_s10, %s718_s10   ;;  %s540_s9 = sphi %s580_s9, %s717_s9  }
   0x5   : > { %s34_s17 = sadd.s32 1, %s556_s13  ;;  %s94_s18 = sadd.s32 1, %s548_s11 }
   0x6   : > { %p36_p0 = scmp.ge.s32.totalorder %s34_s17, 2  ;;  %p104_p1 = scmp.ne.s32.totalorder %s548_s11, %s544_s10 }
   0x7   : > { %p105_p2 = scmp.eq.s32.totalorder %s362_s15, 1  ;;  %p110_p3 = scmp.ne.s32.totalorder %s544_s10, %s540_s9 }
   0x8   : > { %s723_s17 = smov (%p36_p0, %s34_s17), 0  ;;  %p111_p5 = scmp.eq.s32.totalorder %s363_s16, 1 }
   0x9   : > { %p620_p4 = por %p105_p2, %p104_p1  ;;  %s87_s20 = ssub.s32 %s556_s13, %s723_s17 }
   0xa   : > { %p366_p6 = scmp.ge.s32.totalorder %s560_s14, 1  ;;  %p92_p7 = scmp.eq.s32.totalorder %s87_s20, 0 }
   0xb   : > { %p627_p8 = por %p111_p5, %p110_p3  ;;  %p143_p9 = scmp.lt.s32.totalorder %s560_s14, 3 }
   0xc   : > { %s633_s22 = scalar_select %p92_p7, %s548_s11, %s94_s18  }
   0xd   : > { %p144_p10 = pnand %p366_p6, %p143_p9 }
   0xe   : > { %p168_p11 = scmp.lt.s32.totalorder (!%p144_p10), %s552_s12, 1  ;;  %s165_s30 = sand.u32 (!%p144_p10), 1, %s544_s10  }
   0xf   : > { %147 = sbr.rel (%p144_p10) target bundleno = 263 (0x107), region = 28  ;;  %s367_s3 = sshll.u32 (!%p144_p10), %s165_s30, 3 }
  0x10   : > { %s167_s4 = scalar_lea.vmem (!%p144_p10), [#allocation2], %s367_s3  ;;  %s371_s6 = sshll.u32 (!%p144_p10), %s552_s12, 7 }
  0x11   : > { %s282_s5 = sshll.u32 (!%p144_p10), %s167_s4, 4  ;;  %s668_s15 = scalar_lea.hbm (!%p144_p10), %s714_s2, %s371_s6  ;;  %s663_s5 = int_to_ptr.vmem [resolvable:$true] %s282_s5 }
  0x12   : > { %s267_s16 = scalar_lea.sflag (!%p144_p10), [#allocation3], %s165_s30  ;;  %s484_s18 = scalar_lea.vmem (!%p144_p10), %s663_s5, 128 }
  0x13   : > { %p485_p12 = scmp.ne.s32.totalorder (!%p144_p10), %s663_s5, %s484_s18 }
  0x14   : > { %v562_v0 = vmov 0.0   ;;  %vm563_vm0 = vmmov 0   ;;  %s169_s23 = scalar_select %p168_p11, %s552_s12, 1  ;;  %v178_v17 = vld [vmem:[%s712_s0] sm:$0xff] }
  0x15   : > { %392 = vmatprep.subr.mxu0 %v562_v0  ;;  %424 = vmatprep.mubr.msk.f32.mxu0 %vm563_vm0, %v562_v0  ;;  %p486_p13 = pnand %p485_p12, %p620_p4  ;;  %s564_s12 = smov [#allocation2]  }
  0x16   : > { %s374_s24 = sshll.u32 %s169_s23, 7  ;;  %s488_s20 = sshll.u32 %s564_s12, 4  ;;  %s489_s20 = int_to_ptr.vmem [resolvable:$false] %s488_s20 }
  0x17   : > { %s640_s27 = scalar_lea.vmem %s713_s1, %s374_s24  ;;  %p487_p0 = pneg %p486_p13 }
  0x18   : > { %v194_v1 = vld [vmem:[%s640_s27 + $0x78] sm:$0xff]  ;;  %v193_v2 = vld [vmem:[%s640_s27 + $0x70] sm:$0xff]  ;;  %v192_v3 = vld [vmem:[%s640_s27 + $0x68] sm:$0xff]  ;;  %s490_s23 = scalar_lea.vmem %s489_s20, 256  ;;  %p491_p1 = scmp.lt.s32.totalorder %s663_s5, %s489_s20 }
  0x19   : > { %393 = vmatpush3.msra.mxu0 %v194_v1  ;;  %v191_v4 = vld [vmem:[%s640_s27 + $0x60] sm:$0xff]  ;;  %v190_v5 = vld [vmem:[%s640_s27 + $0x58] sm:$0xff]  ;;  %v189_v6 = vld [vmem:[%s640_s27 + $0x50] sm:$0xff]  ;;  %p492_p2 = scmp.lt.s32.totalorder %s490_s23, %s484_s18 }
  0x1a   : > { %394 = vmatprep.subr.mxu0 %v562_v0  ;;  %v188_v7 = vld [vmem:[%s640_s27 + $0x48] sm:$0xff]  ;;  %v187_v8 = vld [vmem:[%s640_s27 + $0x40] sm:$0xff]  ;;  %v186_v9 = vld [vmem:[%s640_s27 + $0x38] sm:$0xff] }
  0x1b   : > { %395 = vmatpush3.msra.mxu0 %v193_v2  ;;  %v185_v10 = vld [vmem:[%s640_s27 + $0x30] sm:$0xff]  ;;  %v184_v11 = vld [vmem:[%s640_s27 + $0x28] sm:$0xff]  ;;  %v183_v12 = vld [vmem:[%s640_s27 + $0x20] sm:$0xff]  ;;  %p493_p3 = por %p492_p2, %p491_p1 }
  0x1c   : > { %396 = vmatprep.subr.mxu0 %v562_v0  ;;  %v182_v13 = vld [vmem:[%s640_s27 + $0x18] sm:$0xff]  ;;  %v181_v14 = vld [vmem:[%s640_s27 + $0x10] sm:$0xff]  ;;  %v180_v15 = vld [vmem:[%s640_s27 + $0x8] sm:$0xff] }
  0x1d   : > { %397 = vmatpush3.msra.mxu0 %v192_v3  ;;  %v179_v16 = vld [vmem:[%s640_s27] sm:$0xff]  ;;  %p494_p5 = pnand %p493_p3, %p487_p0 }
  0x1e   : > { %398 = vmatprep.subr.mxu0 %v562_v0 }
  0x1f   : > { %399 = vmatpush3.msra.mxu0 %v191_v4 }
  0x20   : > { %400 = vmatprep.subr.mxu0 %v562_v0 }
  0x21   : > { %401 = vmatpush3.msra.mxu0 %v190_v5 }
  0x22   : > { %402 = vmatprep.subr.mxu0 %v562_v0 }
  0x23   : > { %403 = vmatpush3.msra.mxu0 %v189_v6 }
  0x24   : > { %404 = vmatprep.subr.mxu0 %v562_v0 }
  0x25   : > { %405 = vmatpush3.msra.mxu0 %v188_v7 }
  0x26   : > { %406 = vmatprep.subr.mxu0 %v562_v0 }
  0x27   : > { %407 = vmatpush3.msra.mxu0 %v187_v8 }
  0x28   : > { %408 = vmatprep.subr.mxu0 %v562_v0 }
  0x29   : > { %409 = vmatpush3.msra.mxu0 %v186_v9 }
  0x2a   : > { %410 = vmatprep.subr.mxu0 %v562_v0 }
  0x2b   : > { %411 = vmatpush3.msra.mxu0 %v185_v10 }
  0x2c   : > { %412 = vmatprep.subr.mxu0 %v562_v0 }
  0x2d   : > { %413 = vmatpush3.msra.mxu0 %v184_v11 }
  0x2e   : > { %414 = vmatprep.subr.mxu0 %v562_v0 }
  0x2f   : > { %415 = vmatpush3.msra.mxu0 %v183_v12 }
  0x30   : > { %416 = vmatprep.subr.mxu0 %v562_v0 }
  0x31   : > { %417 = vmatpush3.msra.mxu0 %v182_v13 }
  0x32   : > { %418 = vmatprep.subr.mxu0 %v562_v0 }
  0x33   : > { %419 = vmatpush3.msra.mxu0 %v181_v14 }
  0x34   : > { %420 = vmatprep.subr.mxu0 %v562_v0 }
  0x35   : > { %421 = vmatpush3.msra.mxu0 %v180_v15 }
  0x36   : > { %422 = vmatprep.subr.mxu0 %v562_v0 }
  0x37   : > { %423 = vmatpush3.msra.mxu0 %v179_v16 }
  0x38   : > { %425 = vmatmul.mubr.f32.vlgmr.msra.gmra.mxu0 %v178_v17 }
  0xf8   : > { %v261_v18 = vpop.f32.mrf.mxu0 }
  0xf9   : > { %265 = vst [vmem:[%s167_s4] sm:$0xff] %v261_v18 }
  0xfa   : > { %v426_v19 = vpop.f32.mrf.mxu0 }
  0xfb   : > { %497 = shalt.err (!%p494_p5)
}
  0xfc   : > { %s498_s24 = scalar_lea.hbm %s668_s15, 128  ;;  %s502_s27 = scalar_lea.hbm %s714_s2, 256 }
  0xfd   : > { %p499_p6 = scmp.ne.s32.totalorder %s668_s15, %s498_s24  ;;  %p503_p10 = scmp.lt.s32.totalorder %s668_s15, %s714_s2 }
  0xfe   : > { %p504_p11 = scmp.lt.s32.totalorder %s502_s27, %s498_s24 }
  0xff   : > { %p500_p7 = pnand %p499_p6, %p620_p4 }
 0x100   : > { %p505_p12 = por %p504_p11, %p503_p10 }
 0x101   : > { %p501_p9 = pneg %p500_p7 }
 0x103   : > { %p506_p13 = pnand %p505_p12, %p501_p9 }
 0x105   : > { %509 = shalt.err (!%p506_p13)
}
 0x106   : > { %427 = dma.vmem_to_hbm [thread:$0]  (%p620_p4), %s663_s5, 128, %s668_s15, %s267_s16  }
 0x107 PF: > { %p433_p0 = scmp.ge.s32.totalorder %s560_s14, 2  ;;  %s294_s30 = sand.u32 1, %s540_s9  }
 0x108   : > { %s295_s3 = scalar_lea.sflag [#allocation3], %s294_s30 }
 0x109   : > { %p430_p1 = pnand %p433_p0, %p627_p8 }
 0x10b   : > { %p431_p2 = pneg %p430_p1 }
 0x10d   : > { %535 = dma.done.wait (%p431_p2), %s295_s3, 128  }
 0x10e   : > { %537 = vsyncadd (%p431_p2), %s295_s3, 4294967168  ;;  %s15_s14 = sadd.s32 1, %s560_s14   ;;  %s717_s9 = smov %s544_s10 }
 0x10f   : > { %p12_p3 = scmp.ge.s32.totalorder %s15_s14, 4   ;;  %s718_s10 = smov %s548_s11 }
 0x110   : > { %s719_s11 = smov %s633_s22  ;;  %s720_s12 = smov %s556_s13 }
 0x111   : > { %s721_s13 = smov %s723_s17  ;;  %14 = sbr.rel (!%p12_p3) target bundleno = 4 (0x4), region = 64 }
 0x116   :  { %300 = vsyncpa [#allocation3], 1 }
 0x117   :  { %302 = vsyncpa [#allocation3 + $0x1], 1 }

</bundles_post_ra>
